<compile_context>
chip_gen: v7x
topology: tpu7x:2x2x1
jax: 0.10.0
libtpu: 0.0.40
codegen_flags: <defaults>
</compile_context>

<pallas_src>
import jax
import jax.numpy as jnp
from jax.experimental import pallas as pl
from jax.experimental.pallas import tpu as pltpu

_LANES = 128
_TARGET_BLOCK_BYTES = 2 * 1024 * 1024  # 4x (dbl-buffered in+out) = 8 MiB VMEM


def _min_sublanes(dtype):
    itemsize = jnp.dtype(dtype).itemsize
    if itemsize >= 4:
        return 8
    if itemsize == 2:
        return 16
    return 32


def _sigma_kernel(params_ref, x_ref, o_ref):
    """params_ref (SMEM f32[3]) = [ddelta, 1/(4*ddelta), 0.25*ddelta]."""
    ddelta = params_ref[0]
    coeff = params_ref[1]
    quarter_delta = params_ref[2]
    x = x_ref[...].astype(jnp.float32)
    # inplace ReLU in the reference mutates x_i -> all later terms use r.
    r = jnp.maximum(x, 0.0)
    smooth = r * r * coeff + 0.5 * r + quarter_delta
    # r >= 0, so |r| > ddelta  ==  r > ddelta.
    o_ref[...] = jnp.where(r > ddelta, r, smooth).astype(o_ref.dtype)


def sigma_activation(x, ddelta):
    """Applies the smoothed-ReLU activation elementwise to x (any shape)."""
    orig_shape = x.shape
    dtype = x.dtype
    itemsize = jnp.dtype(dtype).itemsize
    n = x.size
    min_sub = _min_sublanes(dtype)

    # ---- view the data as a lane-dense 2-D slab ---------------------------
    flat = x.reshape(-1)
    pad = (-n) % _LANES
    if pad:                               # only a <128-element lane tail, ever
        flat = jnp.pad(flat, (0, pad))
    padded = n + pad

    width = _LANES
    for cand in (1024, 512, 256):         # widest lane-dense last dim
        if padded % cand == 0:
            width = cand
            break
    rows = padded // width
    x2d = flat.reshape(rows, width)

    # ---- block choice: ~2 MiB, dtype-aware alignment, >=2 steps if possible
    if rows <= min_sub:
        block_rows = rows                 # single full-extent block
    else:
        target_rows = max(
            min_sub,
            (_TARGET_BLOCK_BYTES // (width * itemsize)) // min_sub * min_sub)
        half_rows = -(-rows // 2)         # cdiv(rows, 2)
        half_rows = -(-half_rows // min_sub) * min_sub
        block_rows = max(min_sub, min(target_rows, half_rows))
    grid = (pl.cdiv(rows, block_rows),)   # last partial block masked by Pallas

    params = jnp.array(
        [ddelta, 1.0 / (4.0 * ddelta), 0.25 * ddelta], dtype=jnp.float32)

    out2d = pl.pallas_call(
        _sigma_kernel,
        out_shape=jax.ShapeDtypeStruct((rows, width), dtype),
        grid_spec=pltpu.PrefetchScalarGridSpec(
            num_scalar_prefetch=0,
            grid=grid,
            in_specs=[
                pl.BlockSpec(memory_space=pltpu.MemorySpace.SMEM),
                pl.BlockSpec((block_rows, width), lambda i: (i, 0)),
            ],
            out_specs=pl.BlockSpec((block_rows, width), lambda i: (i, 0)),
        ),
        compiler_params=pltpu.CompilerParams(
            dimension_semantics=("parallel",)),
        cost_estimate=pl.CostEstimate(
            flops=8 * n, transcendentals=0, bytes_accessed=2 * n * itemsize),
    )(params, x2d)

    out_flat = out2d.reshape(-1)
    if pad:
        out_flat = out_flat[:n]
    return out_flat.reshape(orig_shape)


def _reference(x, ddelta):
    # Pure-JAX reference mirroring the (inplace-ReLU) PyTorch forward.
    coeff = 1.0 / (4.0 * ddelta)
    r = jnp.maximum(x, 0.0)
    return jnp.where(jnp.abs(r) > ddelta, r,
                     r * r * coeff + 0.5 * r + 0.25 * ddelta)


if __name__ == "__main__":
    key = jax.random.PRNGKey(0)
    ddelta = 0.5

    # NCHW conv-style activation input.
    x = jax.random.normal(key, (2, 4, 16, 16), dtype=jnp.float32)
    out = jax.block_until_ready(sigma_activation(x, ddelta))
    assert out.shape == x.shape and out.dtype == x.dtype
    assert jnp.allclose(out, _reference(x, ddelta), atol=1e-6, rtol=1e-6)

    # Awkward size (not a multiple of 128) to exercise the lane-tail path.
    x2 = jax.random.normal(jax.random.PRNGKey(1), (3, 5, 7, 11),
                           dtype=jnp.float32)
    out2 = jax.block_until_ready(sigma_activation(x2, ddelta))
    assert jnp.allclose(out2, _reference(x2, ddelta), atol=1e-6, rtol=1e-6)

    print("KERNEL_OK")
</pallas_src>

<mosaic_0001>
module attributes {stable_mosaic.version = 11 : i64} {
  func.func @_sigma_kernel(%arg0: i32, %arg1: memref<3xf32, #tpu.memory_space<smem>>, %arg2: memref<2x1024xf32, #tpu.memory_space<vmem>>, %arg3: memref<2x1024xf32, #tpu.memory_space<vmem>>) attributes {dimension_semantics = [#tpu.dimension_semantics<parallel>], iteration_bounds = array<i64: 1>, scalar_prefetch = 0 : i64, scratch_operands = 0 : i64, tpu.core_type = #tpu.core_type<tc>, window_params = [{transform_indices = @transform_0, window_bounds = array<i64: 3>}, {transform_indices = @transform_1, window_bounds = array<i64: 2, 1024>}, {transform_indices = @transform_2, window_bounds = array<i64: 2, 1024>}]} {
    %c0 = arith.constant 0 : index
    %0 = memref.load %arg1[%c0] : memref<3xf32, #tpu.memory_space<smem>>
    %c1 = arith.constant 1 : index
    %1 = memref.load %arg1[%c1] : memref<3xf32, #tpu.memory_space<smem>>
    %c2 = arith.constant 2 : index
    %2 = memref.load %arg1[%c2] : memref<3xf32, #tpu.memory_space<smem>>
    %c0_0 = arith.constant 0 : index
    %c0_1 = arith.constant 0 : index
    %3 = vector.load %arg2[%c0_0, %c0_1] : memref<2x1024xf32, #tpu.memory_space<vmem>>, vector<2x1024xf32>
    %cst = arith.constant 0.000000e+00 : f32
    %4 = vector.broadcast %cst : f32 to vector<2x1024xf32>
    %5 = arith.maximumf %3, %4 : vector<2x1024xf32>
    %6 = arith.mulf %5, %5 : vector<2x1024xf32>
    %7 = vector.broadcast %1 : f32 to vector<2x1024xf32>
    %8 = arith.mulf %6, %7 : vector<2x1024xf32>
    %cst_2 = arith.constant 5.000000e-01 : f32
    %9 = vector.broadcast %cst_2 : f32 to vector<2x1024xf32>
    %10 = arith.mulf %9, %5 : vector<2x1024xf32>
    %11 = arith.addf %8, %10 : vector<2x1024xf32>
    %12 = vector.broadcast %2 : f32 to vector<2x1024xf32>
    %13 = arith.addf %11, %12 : vector<2x1024xf32>
    %14 = vector.broadcast %0 : f32 to vector<2x1024xf32>
    %15 = arith.cmpf ogt, %5, %14 : vector<2x1024xf32>
    %16 = arith.select %15, %5, %13 : vector<2x1024xi1>, vector<2x1024xf32>
    %c0_3 = arith.constant 0 : index
    %c0_4 = arith.constant 0 : index
    %17 = vector.load %arg3[%c0_3, %c0_4] : memref<2x1024xf32, #tpu.memory_space<vmem>>, vector<2x1024xf32>
    tpu.vector_store %arg3[%c0_3, %c0_4], %16 {strides = array<i32>} : memref<2x1024xf32, #tpu.memory_space<vmem>>, vector<2x1024xf32>,
    return
  }
  func.func @transform_0(%arg0: i32) -> i32 {
    %c0_i32 = arith.constant 0 : i32
    %c0_i32_0 = arith.constant 0 : i32
    return %c0_i32 : i32
  }
  func.func @transform_1(%arg0: i32) -> (i32, i32) {
    %c0_i32 = arith.constant 0 : i32
    %c0_i32_0 = arith.constant 0 : i32
    return %arg0, %c0_i32 : i32, i32
  }
  func.func @transform_2(%arg0: i32) -> (i32, i32) {
    %c0_i32 = arith.constant 0 : i32
    %c0_i32_0 = arith.constant 0 : i32
    return %arg0, %c0_i32 : i32, i32
  }
}

</mosaic_0001>

<bundles_post_ra>
// kernel: tpu_custom_call.1
= control target key start
LH: loop header
LB: loop body
LE: loop exit
PB: predicated region body
PF: predicated region fallthrough
CT: control target
= control target key end

     0   :  { %7 = vsyncpa [#allocation5], 0  ;;  %s196_s0 = inlined_call_operand.hbm [shape: f32[3], index: 0, kind: input, shape index: {}]   ;;  %s197_s1 = inlined_call_operand.hbm [shape: f32[2,1024], index: 1, kind: input, shape index: {}]   ;;  %s198_s2 = inlined_call_operand.hbm [shape: f32[2,1024], index: 2, kind: output, shape index: {}]  }
   0x1   :  { %8 = vsyncpa [#allocation3], 0 }
   0x2   :  { %9 = vsyncpa [#allocation4], 0  ;;  %s82_s11 = scalar_lea.hbm %s196_s0, 16 }
   0x3   :  { %p83_p0 = scmp.ne.s32.totalorder %s196_s0, %s82_s11  ;;  %p86_p1 = scmp.lt.u32.totalorder %s82_s11, %s196_s0 }
   0x5   :  { %p88_p2 = pnand %p86_p1, %p83_p0 }
   0x7   :  { %91 = shalt.err (!%p88_p2)
}
   0x8   :  { %s142_s16 = smov [#allocation2]   ;;  %s143_s19 = smov [#allocation6]  }
   0x9   :  { %17 = dma.hbm_to_smem %s196_s0, 16, %s142_s16, [#allocation5]  }
   0xa   :  { %s24_s20 = sshll.u32 %s143_s19, 4  ;;  %s92_s23 = scalar_lea.hbm %s197_s1, 256  ;;  %s25_s20 = int_to_ptr.vmem [resolvable:$true] %s24_s20 }
   0xb   :  { %p93_p3 = scmp.ne.s32.totalorder %s197_s1, %s92_s23  ;;  %p96_p4 = scmp.lt.u32.totalorder %s92_s23, %s197_s1 }
   0xd   :  { %p98_p5 = pnand %p96_p4, %p93_p3 }
   0xf   :  { %101 = shalt.err (!%p98_p5)
}
  0x10   :  { %s102_s28 = scalar_lea.vmem %s25_s20, 256  ;;  %p107_p7 = scmp.lt.s32.totalorder %s25_s20, %s25_s20 }
  0x11   :  { %p103_p6 = scmp.ne.s32.totalorder %s25_s20, %s102_s28  ;;  %p108_p8 = scmp.lt.s32.totalorder %s102_s28, %s102_s28 }
  0x13   :  { %p109_p9 = por %p108_p8, %p107_p7 }
  0x15   :  { %p110_p10 = pnand %p109_p9, %p103_p6 }
  0x17   :  { %113 = shalt.err (!%p110_p10)
}
  0x18   :  { %27 = dma.hbm_to_vmem [thread:$0]  %s197_s1, 256, %s25_s20, [#allocation3]  }
  0x19   :  { %136 = dma.done.wait [#allocation5], 16  }
  0x1a   :  { %137 = vsyncadd [#allocation5], 4294967280 }
  0x1b   :  { %138 = dma.done.wait [#allocation3], 256  }
  0x1c   :  { %139 = vsyncadd [#allocation3], 4294967040 }
  0x1d   :  { %34 = sfence }
  0x1e   :  { %s35_s30 = sld [smem:[#allocation2]]  ;;  %s77_s3 = sld [smem:[#allocation2 + $0x1]]  ;;  %v38_v0 = vld [vmem:[#allocation6] sm:$0xff]  ;;  %v39_v1 = vld [vmem:[#allocation6 + $0x8] sm:$0xff] }
  0x1f   :  { %s78_s4 = sld [smem:[#allocation2 + $0x2]]  ;;  %v40_v2 = vmax.f32 %v38_v0, 0.0  ;;  %v41_v3 = vmax.f32 %v39_v1, 0.0  ;;  %s144_s1 = smov [#allocation7]  }
  0x20   :  { %s67_s5 = sshll.u32 %s144_s1, 4  ;;  %s68_s5 = int_to_ptr.vmem [resolvable:$true] %s67_s5 }
  0x21   :  { %v42_v4 = vmul.f32 %v40_v2, %v40_v2  ;;  %v43_v5 = vmul.f32 %v41_v3, %v41_v3  ;;  %v47_v6 = vmul.f32 0.5, %v40_v2  ;;  %v48_v7 = vmul.f32 0.5, %v41_v3  ;;  %s114_s6 = scalar_lea.vmem %s68_s5, 256  ;;  %p119_p12 = scmp.lt.s32.totalorder %s68_s5, %s68_s5 }
  0x22   :  { %p115_p11 = scmp.ne.s32.totalorder %s68_s5, %s114_s6  ;;  %p120_p13 = scmp.lt.s32.totalorder %s114_s6, %s114_s6 }
  0x24   :  { %v44_v8 = vstv %s77_s3  ;;  %v54_v10 = vstv %s35_s30  ;;  %p121_p0 = por %p120_p13, %p119_p12 }
  0x25   :  { %v45_v9 = vmul.f32 %v44_v8, %v42_v4  ;;  %v46_v11 = vmul.f32 %v44_v8, %v43_v5  ;;  %v51_v12 = vstv %s78_s4  ;;  %vm55_vm0 = vcmp.gt.f32.partialorder %v40_v2, %v54_v10 }
  0x26   :  { %vm56_vm1 = vcmp.gt.f32.partialorder %v41_v3, %v54_v10  ;;  %p122_p1 = pnand %p121_p0, %p115_p11 }
  0x27   :  { %v49_v13 = vadd.f32 %v47_v6, %v45_v9  ;;  %v50_v14 = vadd.f32 %v48_v7, %v46_v11 }
  0x29   :  { %v52_v15 = vadd.f32 %v51_v12, %v49_v13  ;;  %v53_v16 = vadd.f32 %v51_v12, %v50_v14 }
  0x2b   :  { %v57_v17 = vsel %vm55_vm0, %v40_v2, %v52_v15  ;;  %v58_v18 = vsel %vm56_vm1, %v41_v3, %v53_v16 }
  0x2c   :  { %59 = vst [vmem:[#allocation7] sm:$0xff] %v57_v17  ;;  %60 = vst [vmem:[#allocation7 + $0x8] sm:$0xff] %v58_v18 }
  0x2d   :  { %125 = shalt.err (!%p122_p1)
}
  0x2e   :  { %s126_s9 = scalar_lea.hbm %s198_s2, 256 }
  0x2f   :  { %p127_p2 = scmp.ne.s32.totalorder %s198_s2, %s126_s9  ;;  %p130_p3 = scmp.lt.u32.totalorder %s126_s9, %s198_s2 }
  0x31   :  { %p132_p4 = pnand %p130_p3, %p127_p2 }
  0x33   :  { %135 = shalt.err (!%p132_p4)
}
  0x34   :  { %70 = dma.vmem_to_hbm [thread:$0]  %s68_s5, 256, %s198_s2, [#allocation4]  }
  0x35   :  { %140 = dma.done.wait [#allocation4], 256  }
  0x36   :  { %141 = vsyncadd [#allocation4], 4294967040 }
  0x37   :  { %74 = vsyncpa [#allocation3], 1 }
  0x38   :  { %75 = vsyncpa [#allocation4], 1 }
  0x39   :  { %76 = vsyncpa [#allocation5], 1 }

</bundles_post_ra>
